<compile_context>
chip_gen: v7x
topology: tpu7x:2x2x1
jax: 0.10.0
libtpu: 0.0.40
codegen_flags: <defaults>
</compile_context>

<pallas_src>
import jax
import jax.numpy as jnp
from jax.experimental import pallas as pl
from jax.experimental.pallas import tpu as pltpu


def _ceil_to(x, m):
    return ((x + m - 1) // m) * m


# ----------------------------------------------------------------------------
# Pallas kernel: fused classification head on a tile of rows
#   h = relu(xb @ W1x + g @ W1g + b1)      (fc1 over the "virtual" concat)
#   o = h @ W2 + b2
# xb/g/W1x/W1g/W2 are bf16, accumulation + bias + relu in f32, bf16 store.
# ----------------------------------------------------------------------------
def head_kernel(xb_ref, g_ref, w1x_ref, w1g_ref, b1_ref, w2_ref, b2_ref, o_ref):
    h = jnp.dot(xb_ref[...], w1x_ref[...], preferred_element_type=jnp.float32)
    h = h + jnp.dot(g_ref[...], w1g_ref[...], preferred_element_type=jnp.float32)
    h = jnp.maximum(h + b1_ref[...], 0.0)            # bias + relu in f32
    # dropout: identity at inference
    o = jnp.dot(h.astype(w2_ref.dtype), w2_ref[...],
                preferred_element_type=jnp.float32)
    o_ref[...] = (o + b2_ref[...]).astype(o_ref.dtype)


def codebert_hybrid_head(xb, g, w1x, w1g, b1, w2, b2, *, tm=512):
    """xb: (N, Hb) hidden, g: (N, G) graph emb  ->  (N, C) bf16 logits."""
    N, Hb = xb.shape
    G = g.shape[1]
    D = w1x.shape[1]
    C = w2.shape[1]

    # Row tile: multiple of 16 (bf16 sublane packing), capped to padded rows.
    rows16 = _ceil_to(N, 16)
    tm = max(16, min(tm, rows16))
    # Keep >= 2 grid steps when there are enough rows so both v7x TensorCores
    # (dimension_semantics=("parallel",)) get work.
    if rows16 >= 32 and rows16 // tm < 2:
        tm = _ceil_to(rows16 // 2, 16)
    n_pad = _ceil_to(N, tm)

    d_pad = _ceil_to(D, 128)     # 128-aligned hidden -> clean MXU tiles
    c_pad = _ceil_to(C, 128)     # lane-dense output stores (unmasked vst)

    # One-time wrapper-side zero padding (weights are tiny; activations only
    # touched when N is not a tile multiple).
    if n_pad != N:
        xb = jnp.pad(xb, ((0, n_pad - N), (0, 0)))
        g = jnp.pad(g, ((0, n_pad - N), (0, 0)))
    if d_pad != D:
        w1x = jnp.pad(w1x, ((0, 0), (0, d_pad - D)))
        w1g = jnp.pad(w1g, ((0, 0), (0, d_pad - D)))
        b1 = jnp.pad(b1, ((0, 0), (0, d_pad - D)))
        w2 = jnp.pad(w2, ((0, d_pad - D), (0, 0)))
    if c_pad != C:
        w2 = jnp.pad(w2, ((0, 0), (0, c_pad - C)))
        b2 = jnp.pad(b2, ((0, 0), (0, c_pad - C)))

    # bf16 streaming / MXU inputs, f32 bias + accumulation inside the kernel.
    xb = xb.astype(jnp.bfloat16)
    g = g.astype(jnp.bfloat16)
    w1x = w1x.astype(jnp.bfloat16)
    w1g = w1g.astype(jnp.bfloat16)
    w2 = w2.astype(jnp.bfloat16)
    b1 = b1.astype(jnp.float32)
    b2 = b2.astype(jnp.float32)

    grid = (n_pad // tm,)
    const = pl.Buffered(1)       # grid-invariant blocks: single VMEM buffer

    grid_spec = pltpu.PrefetchScalarGridSpec(
        num_scalar_prefetch=0,
        grid=grid,
        in_specs=[
            pl.BlockSpec((tm, Hb), lambda i: (i, 0)),          # bert hidden rows
            pl.BlockSpec((tm, G), lambda i: (i, 0)),           # graph emb rows
            pl.BlockSpec((Hb, d_pad), lambda i: (0, 0), pipeline_mode=const),
            pl.BlockSpec((G, d_pad), lambda i: (0, 0), pipeline_mode=const),
            pl.BlockSpec((1, d_pad), lambda i: (0, 0), pipeline_mode=const),
            pl.BlockSpec((d_pad, c_pad), lambda i: (0, 0), pipeline_mode=const),
            pl.BlockSpec((1, c_pad), lambda i: (0, 0), pipeline_mode=const),
        ],
        out_specs=pl.BlockSpec((tm, c_pad), lambda i: (i, 0)),
    )

    cost = pl.CostEstimate(
        flops=2 * n_pad * (Hb + G) * d_pad + 2 * n_pad * d_pad * c_pad,
        transcendentals=0,
        bytes_accessed=(n_pad * (Hb + G) * 2                    # activations in
                        + (Hb + G) * d_pad * 2 + d_pad * c_pad * 2  # weights
                        + d_pad * 4 + c_pad * 4                 # biases
                        + n_pad * c_pad * 2),                   # logits out
    )

    out = pl.pallas_call(
        head_kernel,
        out_shape=jax.ShapeDtypeStruct((n_pad, c_pad), jnp.bfloat16),
        grid_spec=grid_spec,
        compiler_params=pltpu.CompilerParams(
            dimension_semantics=("parallel",),   # shard row tiles across TCs (v7x)
        ),
        cost_estimate=cost,
    )(xb, g, w1x, w1g, b1, w2, b2)

    return out[:N, :C]


# ----------------------------------------------------------------------------
# Full forward (glue in plain JAX: embedding gathers, reshape)
# ----------------------------------------------------------------------------
def forward(params, token_ids, graph_ids, mask):
    B, S = token_ids.shape
    # --- stand-in for codebert_model(...).last_hidden_state  (B, S, Hb) ---
    # Tables are cast to bf16 once (tiny) so the gathers emit bf16 activations
    # directly -- no full-activation dtype-cast pass in HBM.
    xb = params["word_emb"].astype(jnp.bfloat16)[token_ids]
    # --- self.graph_emb(graph_ids)  (B, S, G), padding row is all zeros ---
    g = params["graph_emb"].astype(jnp.bfloat16)[graph_ids]

    Hb = xb.shape[-1]
    G = g.shape[-1]

    logits = codebert_hybrid_head(
        xb.reshape(B * S, Hb), g.reshape(B * S, G),
        params["w1x"], params["w1g"], params["b1"], params["w2"], params["b2"],
    )
    C = params["w2"].shape[1]
    # Module returns f32 logits; cast only the tiny sliced (N, C) result.
    return logits.astype(jnp.float32).reshape(B, S, C)


def reference_forward(params, token_ids, graph_ids, mask):
    """Pure-JAX reference with the same bf16-in / f32-accumulate semantics."""
    xb = params["word_emb"].astype(jnp.bfloat16)[token_ids]
    g = params["graph_emb"].astype(jnp.bfloat16)[graph_ids]
    h = (jnp.dot(xb, params["w1x"].astype(jnp.bfloat16),
                 preferred_element_type=jnp.float32)
         + jnp.dot(g, params["w1g"].astype(jnp.bfloat16),
                   preferred_element_type=jnp.float32)
         + params["b1"][0])
    h = jnp.maximum(h, 0.0)
    o = jnp.dot(h.astype(jnp.bfloat16), params["w2"].astype(jnp.bfloat16),
                preferred_element_type=jnp.float32) + params["b2"][0]
    return o.astype(jnp.bfloat16).astype(jnp.float32)


if __name__ == "__main__":
    # --- small, module-consistent shapes ---
    B, S = 2, 8                 # batch, sequence
    VOCAB = 50                  # stand-in codebert vocab
    BERT_EMB = 32               # bert_emb_size (small)
    GRAPH_EMB = 16              # graph embedding dim
    DENSE_HIDDEN = 32           # dense_hidden (small)
    NUM_CLASSES = 8
    GRAPH_PAD_IDX = 10          # num graph embeddings = pad_idx + 1 = 11

    key = jax.random.PRNGKey(0)
    k = jax.random.split(key, 8)

    # deterministic parameter init
    word_emb = jax.random.normal(k[0], (VOCAB, BERT_EMB), jnp.float32) * 0.02
    graph_tbl = jax.random.normal(k[1], (GRAPH_PAD_IDX, GRAPH_EMB), jnp.float32) * 0.02
    graph_tbl = jnp.concatenate(                     # padding_idx row = zeros
        [graph_tbl, jnp.zeros((1, GRAPH_EMB), jnp.float32)], axis=0
    )
    w1x = jax.random.normal(k[2], (BERT_EMB, DENSE_HIDDEN), jnp.float32) * 0.05
    w1g = jax.random.normal(k[3], (GRAPH_EMB, DENSE_HIDDEN), jnp.float32) * 0.05
    b1 = jax.random.normal(k[4], (1, DENSE_HIDDEN), jnp.float32) * 0.05
    w2 = jax.random.normal(k[5], (DENSE_HIDDEN, NUM_CLASSES), jnp.float32) * 0.05
    b2 = jax.random.normal(k[6], (1, NUM_CLASSES), jnp.float32) * 0.05

    params = dict(word_emb=word_emb, graph_emb=graph_tbl,
                  w1x=w1x, w1g=w1g, b1=b1, w2=w2, b2=b2)

    # deterministic inputs
    token_ids = jax.random.randint(k[7], (B, S), 0, VOCAB, jnp.int32)
    graph_ids = jax.random.randint(jax.random.fold_in(key, 1), (B, S),
                                   0, GRAPH_PAD_IDX + 1, jnp.int32)
    mask = jnp.ones((B, S), jnp.int32)

    logits = forward(params, token_ids, graph_ids, mask)
    logits = jax.block_until_ready(logits)

    ref = reference_forward(params, token_ids, graph_ids, mask)
    assert logits.shape == (B, S, NUM_CLASSES)
    assert jnp.allclose(logits, ref, atol=1e-2, rtol=1e-2), (
        float(jnp.max(jnp.abs(logits - ref)))
    )

    print("KERNEL_OK")
</pallas_src>

<mosaic_0001>
module attributes {stable_mosaic.version = 11 : i64} {
  func.func @head_kernel(%arg0: i32, %arg1: memref<16x32xbf16, #tpu.memory_space<vmem>>, %arg2: memref<16x16xbf16, #tpu.memory_space<vmem>>, %arg3: memref<32x128xbf16, #tpu.memory_space<vmem>>, %arg4: memref<16x128xbf16, #tpu.memory_space<vmem>>, %arg5: memref<1x128xf32, #tpu.memory_space<vmem>>, %arg6: memref<128x128xbf16, #tpu.memory_space<vmem>>, %arg7: memref<1x128xf32, #tpu.memory_space<vmem>>, %arg8: memref<16x128xbf16, #tpu.memory_space<vmem>>) attributes {dimension_semantics = [#tpu.dimension_semantics<parallel>], iteration_bounds = array<i64: 1>, scalar_prefetch = 0 : i64, scratch_operands = 0 : i64, tpu.core_type = #tpu.core_type<tc>, window_params = [{transform_indices = @transform_0, window_bounds = array<i64: 16, 32>}, {transform_indices = @transform_1, window_bounds = array<i64: 16, 16>}, {pipeline_mode = #tpu.pipeline_mode<synchronous>, transform_indices = @transform_2, window_bounds = array<i64: 32, 128>}, {pipeline_mode = #tpu.pipeline_mode<synchronous>, transform_indices = @transform_3, window_bounds = array<i64: 16, 128>}, {pipeline_mode = #tpu.pipeline_mode<synchronous>, transform_indices = @transform_4, window_bounds = array<i64: 1, 128>}, {pipeline_mode = #tpu.pipeline_mode<synchronous>, transform_indices = @transform_5, window_bounds = array<i64: 128, 128>}, {pipeline_mode = #tpu.pipeline_mode<synchronous>, transform_indices = @transform_6, window_bounds = array<i64: 1, 128>}, {transform_indices = @transform_7, window_bounds = array<i64: 16, 128>}]} {
    %c0 = arith.constant 0 : index
    %c0_0 = arith.constant 0 : index
    %0 = vector.load %arg1[%c0, %c0_0] : memref<16x32xbf16, #tpu.memory_space<vmem>>, vector<16x32xbf16>
    %c0_1 = arith.constant 0 : index
    %c0_2 = arith.constant 0 : index
    %1 = vector.load %arg3[%c0_1, %c0_2] : memref<32x128xbf16, #tpu.memory_space<vmem>>, vector<32x128xbf16>
    %cst = arith.constant dense<0.000000e+00> : vector<16x128xf32>
    %2 = tpu.matmul %0, %1, %cst {dimension_numbers = #tpu.dot_dimension_numbers<[1], [0], [0], [1], [0, 0, 1, 1], [], []>} : vector<16x32xbf16>, vector<32x128xbf16>, vector<16x128xf32> -> vector<16x128xf32>
    %c0_3 = arith.constant 0 : index
    %c0_4 = arith.constant 0 : index
    %3 = vector.load %arg2[%c0_3, %c0_4] : memref<16x16xbf16, #tpu.memory_space<vmem>>, vector<16x16xbf16>
    %c0_5 = arith.constant 0 : index
    %c0_6 = arith.constant 0 : index
    %4 = vector.load %arg4[%c0_5, %c0_6] : memref<16x128xbf16, #tpu.memory_space<vmem>>, vector<16x128xbf16>
    %cst_7 = arith.constant dense<0.000000e+00> : vector<16x128xf32>
    %5 = tpu.matmul %3, %4, %cst_7 {dimension_numbers = #tpu.dot_dimension_numbers<[1], [0], [0], [1], [0, 0, 1, 1], [], []>} : vector<16x16xbf16>, vector<16x128xbf16>, vector<16x128xf32> -> vector<16x128xf32>
    %6 = arith.addf %2, %5 : vector<16x128xf32>
    %c0_8 = arith.constant 0 : index
    %c0_9 = arith.constant 0 : index
    %7 = vector.load %arg5[%c0_8, %c0_9] : memref<1x128xf32, #tpu.memory_space<vmem>>, vector<1x128xf32>
    %8 = vector.broadcast %7 : vector<1x128xf32> to vector<16x128xf32>
    %9 = arith.addf %6, %8 : vector<16x128xf32>
    %cst_10 = arith.constant 0.000000e+00 : f32
    %10 = vector.broadcast %cst_10 : f32 to vector<16x128xf32>
    %11 = arith.maximumf %9, %10 : vector<16x128xf32>
    %12 = arith.truncf %11 : vector<16x128xf32> to vector<16x128xbf16>
    %c0_11 = arith.constant 0 : index
    %c0_12 = arith.constant 0 : index
    %13 = vector.load %arg6[%c0_11, %c0_12] : memref<128x128xbf16, #tpu.memory_space<vmem>>, vector<128x128xbf16>
    %cst_13 = arith.constant dense<0.000000e+00> : vector<16x128xf32>
    %14 = tpu.matmul %12, %13, %cst_13 {dimension_numbers = #tpu.dot_dimension_numbers<[1], [0], [0], [1], [0, 0, 1, 1], [], []>} : vector<16x128xbf16>, vector<128x128xbf16>, vector<16x128xf32> -> vector<16x128xf32>
    %c0_14 = arith.constant 0 : index
    %c0_15 = arith.constant 0 : index
    %15 = vector.load %arg7[%c0_14, %c0_15] : memref<1x128xf32, #tpu.memory_space<vmem>>, vector<1x128xf32>
    %16 = vector.broadcast %15 : vector<1x128xf32> to vector<16x128xf32>
    %17 = arith.addf %14, %16 : vector<16x128xf32>
    %18 = arith.truncf %17 : vector<16x128xf32> to vector<16x128xbf16>
    %c0_16 = arith.constant 0 : index
    %c0_17 = arith.constant 0 : index
    %19 = vector.load %arg8[%c0_16, %c0_17] : memref<16x128xbf16, #tpu.memory_space<vmem>>, vector<16x128xbf16>
    tpu.vector_store %arg8[%c0_16, %c0_17], %18 {strides = array<i32>} : memref<16x128xbf16, #tpu.memory_space<vmem>>, vector<16x128xbf16>,
    return
  }
  func.func @transform_0(%arg0: i32) -> (i32, i32) {
    %c0_i32 = arith.constant 0 : i32
    %c0_i32_0 = arith.constant 0 : i32
    return %arg0, %c0_i32 : i32, i32
  }
  func.func @transform_1(%arg0: i32) -> (i32, i32) {
    %c0_i32 = arith.constant 0 : i32
    %c0_i32_0 = arith.constant 0 : i32
    return %arg0, %c0_i32 : i32, i32
  }
  func.func @transform_2(%arg0: i32) -> (i32, i32) {
    %c0_i32 = arith.constant 0 : i32
    %c0_i32_0 = arith.constant 0 : i32
    %c0_i32_1 = arith.constant 0 : i32
    return %c0_i32, %c0_i32_0 : i32, i32
  }
  func.func @transform_3(%arg0: i32) -> (i32, i32) {
    %c0_i32 = arith.constant 0 : i32
    %c0_i32_0 = arith.constant 0 : i32
    %c0_i32_1 = arith.constant 0 : i32
    return %c0_i32, %c0_i32_0 : i32, i32
  }
  func.func @transform_4(%arg0: i32) -> (i32, i32) {
    %c0_i32 = arith.constant 0 : i32
    %c0_i32_0 = arith.constant 0 : i32
    %c0_i32_1 = arith.constant 0 : i32
    return %c0_i32, %c0_i32_0 : i32, i32
  }
  func.func @transform_5(%arg0: i32) -> (i32, i32) {
    %c0_i32 = arith.constant 0 : i32
    %c0_i32_0 = arith.constant 0 : i32
    %c0_i32_1 = arith.constant 0 : i32
    return %c0_i32, %c0_i32_0 : i32, i32
  }
  func.func @transform_6(%arg0: i32) -> (i32, i32) {
    %c0_i32 = arith.constant 0 : i32
    %c0_i32_0 = arith.constant 0 : i32
    %c0_i32_1 = arith.constant 0 : i32
    return %c0_i32, %c0_i32_0 : i32, i32
  }
  func.func @transform_7(%arg0: i32) -> (i32, i32) {
    %c0_i32 = arith.constant 0 : i32
    %c0_i32_0 = arith.constant 0 : i32
    return %arg0, %c0_i32 : i32, i32
  }
}

</mosaic_0001>

<bundles_post_ra>
// kernel: tpu_custom_call.1
= control target key start
LH: loop header
LB: loop body
LE: loop exit
PB: predicated region body
PF: predicated region fallthrough
CT: control target
= control target key end

     0   :  { %12 = vsyncpa [#allocation3], 0  ;;  %s725_s0 = inlined_call_operand.hbm [shape: bf16[16,32], index: 0, kind: input, shape index: {}]   ;;  %s726_s1 = inlined_call_operand.hbm [shape: bf16[16,16], index: 1, kind: input, shape index: {}]   ;;  %s727_s2 = inlined_call_operand.hbm [shape: bf16[32,128], index: 2, kind: input, shape index: {}]   ;;  %s728_s3 = inlined_call_operand.vmem [shape: bf16[16,128], index: 3, kind: input, shape index: {}]   ;;  %s729_s4 = inlined_call_operand.vmem [shape: f32[1,128], index: 4, kind: input, shape index: {}]   ;;  %s730_s5 = inlined_call_operand.hbm [shape: bf16[128,128], index: 5, kind: input, shape index: {}]   ;;  %s731_s6 = inlined_call_operand.vmem [shape: f32[1,128], index: 6, kind: input, shape index: {}]   ;;  %s732_s7 = inlined_call_operand.hbm [shape: bf16[16,128], index: 7, kind: output, shape index: {}]  }
   0x1   :  { %13 = vsyncpa [#allocation6], 0 }
   0x2   :  { %14 = vsyncpa [#allocation9], 0 }
   0x3   :  { %15 = vsyncpa [#allocation4], 0  ;;  %s578_s24 = smov [#allocation5]   ;;  %s579_s26 = smov [#allocation2]  }
   0x4   :  { %s33_s25 = sshll.u32 %s578_s24, 4  ;;  %s21_s27 = sshll.u32 %s579_s26, 4  ;;  %s34_s25 = int_to_ptr.vmem [resolvable:$true] %s33_s25  ;;  %s627_s27 = int_to_ptr.vmem [resolvable:$true] %s21_s27 }
   0x5   :  { %s460_s30 = scalar_lea.hbm %s726_s1, 128 }
   0x6   :  { %p461_p0 = scmp.ne.s32.totalorder %s726_s1, %s460_s30  ;;  %p464_p1 = scmp.lt.u32.totalorder %s460_s30, %s726_s1 }
   0x8   :  { %p466_p2 = pnand %p464_p1, %p461_p0 }
   0xa   :  { %469 = shalt.err (!%p466_p2)
}
   0xb   :  { %s470_s12 = scalar_lea.vmem %s34_s25, 128  ;;  %p475_p4 = scmp.lt.s32.totalorder %s34_s25, %s34_s25 }
   0xc   :  { %p471_p3 = scmp.ne.s32.totalorder %s34_s25, %s470_s12  ;;  %p476_p5 = scmp.lt.s32.totalorder %s470_s12, %s470_s12 }
   0xe   :  { %p477_p6 = por %p476_p5, %p475_p4 }
  0x10   :  { %p478_p7 = pnand %p477_p6, %p471_p3 }
  0x12   :  { %481 = shalt.err (!%p478_p7)
}
  0x13   :  { %s580_s13 = smov 64   ;;  %s581_s14 = smov 4  }
  0x14   :  { %39 = dma.hbm_to_vmem [thread:$0]  %s726_s1, 128, %s34_s25, [#allocation6], %s580_s13, %s580_s13, %s581_s14  }
  0x15   :  { %s482_s19 = scalar_lea.hbm %s725_s0, 128 }
  0x16   :  { %p483_p8 = scmp.ne.s32.totalorder %s725_s0, %s482_s19  ;;  %p486_p9 = scmp.lt.u32.totalorder %s482_s19, %s725_s0 }
  0x18   :  { %p488_p10 = pnand %p486_p9, %p483_p8 }
  0x1a   :  { %491 = shalt.err (!%p488_p10)
}
  0x1b   :  { %s492_s24 = scalar_lea.vmem %s627_s27, 128  ;;  %p497_p12 = scmp.lt.s32.totalorder %s627_s27, %s627_s27 }
  0x1c   :  { %p493_p11 = scmp.ne.s32.totalorder %s627_s27, %s492_s24  ;;  %p498_p13 = scmp.lt.s32.totalorder %s492_s24, %s492_s24 }
  0x1e   :  { %p499_p0 = por %p498_p13, %p497_p12 }
  0x20   :  { %p500_p1 = pnand %p499_p0, %p493_p11 }
  0x22   :  { %503 = shalt.err (!%p500_p1)
}
  0x23   :  { %27 = dma.hbm_to_vmem [thread:$0]  %s725_s0, 128, %s627_s27, [#allocation3], %s580_s13, %s580_s13, %s581_s14  }
  0x24   :  { %s582_s26 = smov [#allocation7]   ;;  %s583_s29 = smov [#allocation8]  }
  0x25   :  { %s45_s28 = sshll.u32 %s582_s26, 4  ;;  %s61_s30 = sshll.u32 %s583_s29, 4  ;;  %s46_s28 = int_to_ptr.vmem [resolvable:$true] %s45_s28  ;;  %s664_s30 = int_to_ptr.vmem [resolvable:$true] %s61_s30 }
  0x26   :  { %s504_s10 = scalar_lea.hbm %s727_s2, 256 }
  0x27   :  { %p505_p2 = scmp.ne.s32.totalorder %s727_s2, %s504_s10  ;;  %p508_p3 = scmp.lt.u32.totalorder %s504_s10, %s727_s2 }
  0x29   :  { %p510_p4 = pnand %p508_p3, %p505_p2 }
  0x2b   :  { %513 = shalt.err (!%p510_p4)
}
  0x2c   :  { %s514_s0 = scalar_lea.vmem %s46_s28, 256  ;;  %p519_p6 = scmp.lt.s32.totalorder %s46_s28, %s46_s28 }
  0x2d   :  { %p515_p5 = scmp.ne.s32.totalorder %s46_s28, %s514_s0  ;;  %p520_p7 = scmp.lt.s32.totalorder %s514_s0, %s514_s0 }
  0x2f   :  { %p521_p8 = por %p520_p7, %p519_p6 }
  0x31   :  { %p522_p9 = pnand %p521_p8, %p515_p5 }
  0x33   :  { %525 = shalt.err (!%p522_p9)
}
  0x34   :  { %51 = dma.hbm_to_vmem [thread:$0]  %s727_s2, 256, %s46_s28, [#allocation6], %s580_s13, %s580_s13, %s581_s14  }
  0x35   :  { %s526_s20 = scalar_lea.hbm %s730_s5, 1024 }
  0x36   :  { %p527_p10 = scmp.ne.s32.totalorder %s730_s5, %s526_s20  ;;  %p530_p11 = scmp.lt.u32.totalorder %s526_s20, %s730_s5 }
  0x38   :  { %p532_p12 = pnand %p530_p11, %p527_p10 }
  0x3a   :  { %535 = shalt.err (!%p532_p12)
}
  0x3b   :  { %s536_s1 = scalar_lea.vmem %s664_s30, 1024  ;;  %p541_p0 = scmp.lt.s32.totalorder %s664_s30, %s664_s30 }
  0x3c   :  { %p537_p13 = scmp.ne.s32.totalorder %s664_s30, %s536_s1  ;;  %p542_p1 = scmp.lt.s32.totalorder %s536_s1, %s536_s1 }
  0x3e   :  { %p543_p2 = por %p542_p1, %p541_p0 }
  0x40   :  { %p544_p3 = pnand %p543_p2, %p537_p13 }
  0x42   :  { %547 = shalt.err (!%p544_p3)
}
  0x43   :  { %67 = dma.hbm_to_vmem [thread:$0]  %s730_s5, 1024, %s664_s30, [#allocation9], %s580_s13, %s580_s13, %s581_s14  }
  0x44   :  { %570 = dma.done.wait [#allocation3], 128  }
  0x45   :  { %571 = vsyncadd [#allocation3], 4294967168 }
  0x46   :  { %572 = dma.done.wait [#allocation6], 384  }
  0x47   :  { %573 = vsyncadd [#allocation6], 4294966912 }
  0x48   :  { %574 = dma.done.wait [#allocation9], 1024  }
  0x49   :  { %575 = vsyncadd [#allocation9], 4294966272  ;;  %v584_v0 = vmov 0.0   ;;  %vm585_vm0 = vmmov 0   ;;  %v447_v1 = vld [vmem:[%s728_s3] sm:$0xff]   ;;  %v448_v2 = vld [vmem:[#allocation5] sm:$0xff]  }
  0x4a   :  { %404 = vmatprep.subr.bf16.mxu1 %v584_v0  ;;  %406 = vmatprep.mubr.msk.bf16.mxu1 %vm585_vm0, %v584_v0  ;;  %vm104_vm1 = vcmask 130048   ;;  %v449_v3 = vld [vmem:[#allocation7] sm:$0xff]   ;;  %v452_v4 = vld [vmem:[#allocation8] sm:$0xff]   ;;  %v450_v5 = vld [vmem:[#allocation7 + $0x8] sm:$0xff]   ;;  %vm166_vm2 = vcmask 261120   ;;  %s586_s8 = smov [#allocation10]  }
  0x4b   :  { %418 = vmatprep.subr.bf16.mxu0 %v584_v0  ;;  %434 = vmatprep.mubr.msk.bf16.mxu0 %vm585_vm0, %v584_v0  ;;  %v451_v6 = vld [vmem:[#allocation2] sm:$0xff]   ;;  %v453_v7 = vld [vmem:[#allocation8 + $0x8] sm:$0xff]   ;;  %v454_v8 = vld [vmem:[#allocation8 + $0x10] sm:$0xff]  }
  0x4c   :  { %405 = vmatpush3.bf16.msra.mxu1 %v447_v1  ;;  %419 = vmatpush3.bf16.msra.mxu0 %v452_v4  ;;  %v455_v9 = vld [vmem:[#allocation8 + $0x18] sm:$0xff]   ;;  %v456_v10 = vld [vmem:[#allocation8 + $0x20] sm:$0xff]   ;;  %v457_v11 = vld [vmem:[#allocation8 + $0x28] sm:$0xff]  }
  0x4d   :  { %410 = vmatprep.subr.bf16.mxu1 %v584_v0  ;;  %420 = vmatprep.subr.bf16.mxu0 %v584_v0  ;;  %v458_v12 = vld [vmem:[#allocation8 + $0x30] sm:$0xff]   ;;  %v459_v13 = vld [vmem:[#allocation8 + $0x38] sm:$0xff]   ;;  %v371_v19 = vld [vmem:[%s729_s4] ss:$0 sm:$0xff]  ;;  %s350_s4 = sshll.u32 %s586_s8, 4  ;;  %s351_s4 = int_to_ptr.vmem [resolvable:$true] %s350_s4 }
  0x4e   :  { %v372_v30 = vld [vmem:[%s731_s6] ss:$0 sm:$0xff]  ;;  %s548_s9 = scalar_lea.vmem %s351_s4, 128  ;;  %p553_p5 = scmp.lt.s32.totalorder %s351_s4, %s351_s4 }
  0x4f   :  { %407 = vmatmul.mubr.msk.bf16.vlgmr.msra.gmra.mrb[0].mxu1 %vm104_vm1, %v448_v2  ;;  %p549_p4 = scmp.ne.s32.totalorder %s351_s4, %s548_s9  ;;  %p554_p6 = scmp.lt.s32.totalorder %s548_s9, %s548_s9 }
  0x50   :  { %411 = vmatpush3.bf16.msra.mxu1 %v449_v3  ;;  %414 = vmatprep.mubr.msk.bf16.mxu1 %vm585_vm0, %v584_v0 }
  0x51   :  { %412 = vmatprep.subr.bf16.mxu1 %v584_v0  ;;  %421 = vmatpush3.bf16.msra.mxu0 %v453_v7  ;;  %p555_p7 = por %p554_p6, %p553_p5 }
  0x52   :  { %422 = vmatprep.subr.bf16.mxu0 %v584_v0 }
  0x53   :  { %p556_p8 = pnand %p555_p7, %p549_p4 }
  0x54   :  { %413 = vmatpush3.bf16.msra.mxu1 %v450_v5 }
  0x55   :  { %423 = vmatpush3.bf16.msra.mxu0 %v454_v8 }
  0x56   :  { %424 = vmatprep.subr.bf16.mxu0 %v584_v0 }
  0x57   :  { %415 = vmatmul.mubr.msk.bf16.vlgmr.msra.gmra.mrb[4].mxu1 %vm166_vm2, %v451_v6 }
  0x59   :  { %425 = vmatpush3.bf16.msra.mxu0 %v455_v9 }
  0x5a   :  { %426 = vmatprep.subr.bf16.mxu0 %v584_v0 }
  0x5d   :  { %427 = vmatpush3.bf16.msra.mxu0 %v456_v10 }
  0x5e   :  { %428 = vmatprep.subr.bf16.mxu0 %v584_v0 }
  0x61   :  { %429 = vmatpush3.bf16.msra.mxu0 %v457_v11 }
  0x62   :  { %430 = vmatprep.subr.bf16.mxu0 %v584_v0 }
  0x65   :  { %431 = vmatpush3.bf16.msra.mxu0 %v458_v12 }
  0x66   :  { %432 = vmatprep.subr.bf16.mxu0 %v584_v0 }
  0x69   :  { %433 = vmatpush3.bf16.msra.mxu0 %v459_v13 }
 0x122   :  { %v142_v14 = vpop.f32.mrb[0].mxu1 }
 0x123   :  { %v408_v15 = vpop.f32.mrb[1].mxu1 }
 0x124   :  { %v145_v16 = vpop.f32.mrb[2].mxu1 }
 0x125   :  { %v409_v17 = vpop.f32.mrb[3].mxu1 }
 0x12a   :  { %v204_v18 = vpop.f32.mrb[4].mxu1 }
 0x12b   :  { %v205_v20 = vadd.f32 %v204_v18, %v142_v14  ;;  %v416_v21 = vpop.f32.mrb[5].mxu1 }
 0x12c   :  { %v207_v22 = vpop.f32.mrb[6].mxu1 }
 0x12d   :  { %v218_v23 = vadd.f32 %v371_v19, %v205_v20  ;;  %v208_v24 = vadd.f32 %v207_v22, %v145_v16  ;;  %v417_v25 = vpop.f32.mrb[7].mxu1 }
 0x12f   :  { %v219_v26 = vadd.f32 %v371_v19, %v208_v24  ;;  %v220_v27 = vmax.f32 %v218_v23, 0.0 }
 0x131   :  { %v221_v28 = vmax.f32 %v219_v26, 0.0 }
 0x133   :  { %v222_v29 = vpack.c.bf16 %v221_v28, %v220_v27 }
 0x135   :  { %435 = vmatmul.mubr.bf16.vlgmr.msra.gmra.mrb[0].mxu0 %v222_v29 }
 0x208   :  { %v328_v31 = vpop.f32.mrb[0].mxu0 }
 0x209   :  { %v436_v32 = vpop.f32.mrb[1].mxu0  ;;  %v329_v34 = vadd.f32 %v372_v30, %v328_v31 }
 0x20a   :  { %v331_v33 = vpop.f32.mrb[2].mxu0 }
 0x20b   :  { %v332_v35 = vadd.f32 %v372_v30, %v331_v33  ;;  %v437_v36 = vpop.f32.mrb[3].mxu0 }
 0x20d   :  { %v388_v37 = vpack.c.bf16 %v332_v35, %v329_v34 }
 0x20f   :  { %389 = vst [vmem:[#allocation10] sm:$0xff] %v388_v37  }
 0x210   :  { %559 = shalt.err (!%p556_p8)
}
 0x211   :  { %s560_s11 = scalar_lea.hbm %s732_s7, 128 }
 0x212   :  { %p561_p9 = scmp.ne.s32.totalorder %s732_s7, %s560_s11  ;;  %p564_p10 = scmp.lt.u32.totalorder %s560_s11, %s732_s7 }
 0x214   :  { %p566_p11 = pnand %p564_p10, %p561_p9 }
 0x216   :  { %569 = shalt.err (!%p566_p11)
}
 0x217   :  { %356 = dma.vmem_to_hbm [thread:$0]  %s351_s4, 128, %s732_s7, [#allocation4], %s580_s13, %s580_s13, %s581_s14  }
 0x218   :  { %576 = dma.done.wait [#allocation4], 128  }
 0x219   :  { %577 = vsyncadd [#allocation4], 4294967168 }
 0x21a   :  { %360 = vsyncpa [#allocation3], 1 }
 0x21b   :  { %361 = vsyncpa [#allocation6], 1 }
 0x21c   :  { %362 = vsyncpa [#allocation9], 1 }
 0x21d   :  { %363 = vsyncpa [#allocation4], 1 }

</bundles_post_ra>
